<compile_context>
chip_gen: v6e
topology: v6e:2x2x1
jax: 0.10.0
libtpu: 0.0.40
codegen_flags: <defaults>
</compile_context>

<pallas_src>
import functools

import jax
import jax.numpy as jnp
from jax.experimental import pallas as pl
from jax.experimental.pallas import tpu as pltpu


def _round_up(n, m):
    return (n + m - 1) // m * m


def _choose_tiling(batch, batch_tile):
    """Pick (batch tile, padded batch). Small batches -> one grid step; large
    batches -> an even number of tiles (for v7x's 2 TCs), capped at batch_tile."""
    b8 = _round_up(batch, 8)
    if b8 <= 256:
        return b8, b8
    n_tiles = max(2, pl.cdiv(b8, batch_tile))
    if n_tiles % 2:
        n_tiles += 1
    bt = _round_up(pl.cdiv(b8, n_tiles), 8)
    b_pad = _round_up(b8, bt)
    return bt, b_pad


def _forward_tile(x_ref, w1_ref, b1_ref, w2_ref, b2_ref):
    # Whole forward fused on one VMEM-resident batch tile:
    #   h = relu(x @ W1 + b1) ; q = h @ W2 + b2
    h = jnp.dot(x_ref[...], w1_ref[...], preferred_element_type=jnp.float32)
    h = jnp.maximum(h + b1_ref[...], 0.0)
    return jnp.dot(h, w2_ref[...], preferred_element_type=jnp.float32) + b2_ref[...]


def qnet_kernel(x_ref, w1_ref, b1_ref, w2_ref, b2_ref, o_ref):
    o_ref[...] = _forward_tile(x_ref, w1_ref, b1_ref, w2_ref, b2_ref).astype(o_ref.dtype)


def qnet_act_kernel(x_ref, w1_ref, b1_ref, w2_ref, b2_ref, a_ref):
    # Fused epilogue: greedy action = argmax over actions, Q never hits HBM.
    q = _forward_tile(x_ref, w1_ref, b1_ref, w2_ref, b2_ref)
    m = jnp.max(q, axis=-1, keepdims=True)
    ids = jax.lax.broadcasted_iota(jnp.int32, q.shape, 1)
    first_max = jnp.min(
        jnp.where(q >= m, ids, jnp.iinfo(jnp.int32).max), axis=-1, keepdims=True)
    a_ref[...] = first_max


def _qnet_call(kernel, out_dtype, out_cols, x, w1, b1, w2, b2, batch_tile):
    batch, state_dim = x.shape
    hidden_dim = w1.shape[1]
    action_dim = w2.shape[1]

    batch_tile = max(8, _round_up(batch_tile, 8))      # defensive (8-sublane rule)
    bt, b_pad = _choose_tiling(batch, batch_tile)

    x_p = x.astype(jnp.float32)
    if b_pad != batch:
        x_p = jnp.pad(x_p, ((0, b_pad - batch), (0, 0)))   # zero rows -> exact math

    grid = (b_pad // bt,)

    flops = 2 * b_pad * (state_dim * hidden_dim + hidden_dim * action_dim)
    bytes_accessed = 4 * (b_pad * state_dim + state_dim * hidden_dim + hidden_dim
                          + hidden_dim * action_dim + action_dim + b_pad * out_cols)

    out = pl.pallas_call(
        kernel,
        out_shape=jax.ShapeDtypeStruct((b_pad, out_cols), out_dtype),
        grid_spec=pltpu.PrefetchScalarGridSpec(
            num_scalar_prefetch=0,
            grid=grid,
            in_specs=[
                pl.BlockSpec((bt, state_dim), lambda i: (i, 0)),          # x tile
                pl.BlockSpec((state_dim, hidden_dim), lambda i: (0, 0)),  # W1 (resident)
                pl.BlockSpec((1, hidden_dim), lambda i: (0, 0)),          # b1 (resident)
                pl.BlockSpec((hidden_dim, action_dim), lambda i: (0, 0)), # W2 (resident)
                pl.BlockSpec((1, action_dim), lambda i: (0, 0)),          # b2 (resident)
            ],
            out_specs=pl.BlockSpec((bt, out_cols), lambda i: (i, 0)),
        ),
        compiler_params=pltpu.CompilerParams(
            dimension_semantics=("parallel",),   # batch tiles shard across TCs (v7x)
        ),
        cost_estimate=pl.CostEstimate(
            flops=flops, transcendentals=0, bytes_accessed=bytes_accessed),
    )(x_p, w1, b1, w2, b2)

    return out[:batch]


@functools.partial(jax.jit, static_argnames=("batch_tile",))
def qnet_forward(x, w1, b1, w2, b2, *, batch_tile=2048):
    """x: [B, state_dim] f32. Returns Q-values [B, action_dim] f32 (module forward)."""
    return _qnet_call(qnet_kernel, jnp.float32, w2.shape[1], x, w1, b1, w2, b2, batch_tile)


@functools.partial(jax.jit, static_argnames=("batch_tile",))
def qnet_greedy_action(x, w1, b1, w2, b2, *, batch_tile=2048):
    """Fused acting path: argmax_a Q(s, a). Returns int32 actions [B]."""
    out = _qnet_call(qnet_act_kernel, jnp.int32, 1, x, w1, b1, w2, b2, batch_tile)
    return out[:, 0]


def init_qnet_params(key, state_dim, hidden_dim, action_dim):
    """torch.nn.Linear-style init U(-1/sqrt(fan_in), 1/sqrt(fan_in)); weights stored
    pre-transposed as [in, out] so no per-call layout work is needed."""
    k1, k2, k3, k4 = jax.random.split(key, 4)
    bound1 = 1.0 / jnp.sqrt(state_dim)
    bound2 = 1.0 / jnp.sqrt(hidden_dim)
    w1 = jax.random.uniform(k1, (state_dim, hidden_dim), jnp.float32, -bound1, bound1)
    b1 = jax.random.uniform(k2, (1, hidden_dim), jnp.float32, -bound1, bound1)
    w2 = jax.random.uniform(k3, (hidden_dim, action_dim), jnp.float32, -bound2, bound2)
    b2 = jax.random.uniform(k4, (1, action_dim), jnp.float32, -bound2, bound2)
    return w1, b1, w2, b2


if __name__ == "__main__":
    # CartPole-v1: state_dim=4, action_dim=2; hidden_dim=128 as in the module.
    batch, state_dim, hidden_dim, action_dim = 2, 4, 128, 2

    key = jax.random.PRNGKey(0)
    kx, kp = jax.random.split(key)
    x = jax.random.normal(kx, (batch, state_dim), jnp.float32)
    w1, b1, w2, b2 = init_qnet_params(kp, state_dim, hidden_dim, action_dim)

    def ref_fwd(xv):
        return jnp.maximum(xv @ w1 + b1, 0.0) @ w2 + b2

    # Small (acting) batch: Q-values.
    out = jax.block_until_ready(qnet_forward(x, w1, b1, w2, b2))
    assert out.shape == (batch, action_dim)
    assert jnp.allclose(out, ref_fwd(x), atol=1e-5, rtol=1e-5)

    # Fused argmax epilogue (greedy acting path).
    act = jax.block_until_ready(qnet_greedy_action(x, w1, b1, w2, b2))
    assert act.shape == (batch,)
    assert jnp.array_equal(act.astype(jnp.int32),
                           jnp.argmax(ref_fwd(x), axis=-1).astype(jnp.int32))

    # Larger "replay minibatch" exercising the multi-tile path (grid=(2,)).
    xb = jax.random.normal(kx, (1024, state_dim), jnp.float32)
    outb = jax.block_until_ready(qnet_forward(xb, w1, b1, w2, b2))
    assert outb.shape == (1024, action_dim)
    assert jnp.allclose(outb, ref_fwd(xb), atol=1e-4, rtol=1e-4)

    actb = jax.block_until_ready(qnet_greedy_action(xb, w1, b1, w2, b2))
    assert actb.shape == (1024,)
    assert jnp.array_equal(actb.astype(jnp.int32),
                           jnp.argmax(ref_fwd(xb), axis=-1).astype(jnp.int32))

    # TODO(synk): add a gather(a) + TD-target epilogue variant for the full DQN
    # training step (same pattern as qnet_act_kernel).
    print("KERNEL_OK")
</pallas_src>

<mosaic_0001>
module attributes {stable_mosaic.version = 11 : i64} {
  func.func @qnet_kernel(%arg0: i32, %arg1: memref<8x4xf32, #tpu.memory_space<vmem>>, %arg2: memref<4x128xf32, #tpu.memory_space<vmem>>, %arg3: memref<1x128xf32, #tpu.memory_space<vmem>>, %arg4: memref<128x2xf32, #tpu.memory_space<vmem>>, %arg5: memref<1x2xf32, #tpu.memory_space<vmem>>, %arg6: memref<8x2xf32, #tpu.memory_space<vmem>>) attributes {dimension_semantics = [#tpu.dimension_semantics<parallel>], iteration_bounds = array<i64: 1>, scalar_prefetch = 0 : i64, scratch_operands = 0 : i64, tpu.core_type = #tpu.core_type<tc>, window_params = [{transform_indices = @transform_0, window_bounds = array<i64: 8, 4>}, {pipeline_mode = #tpu.pipeline_mode<synchronous>, transform_indices = @transform_1, window_bounds = array<i64: 4, 128>}, {pipeline_mode = #tpu.pipeline_mode<synchronous>, transform_indices = @transform_2, window_bounds = array<i64: 1, 128>}, {pipeline_mode = #tpu.pipeline_mode<synchronous>, transform_indices = @transform_3, window_bounds = array<i64: 128, 2>}, {pipeline_mode = #tpu.pipeline_mode<synchronous>, transform_indices = @transform_4, window_bounds = array<i64: 1, 2>}, {transform_indices = @transform_5, window_bounds = array<i64: 8, 2>}]} {
    %c0 = arith.constant 0 : index
    %c0_0 = arith.constant 0 : index
    %0 = vector.load %arg1[%c0, %c0_0] : memref<8x4xf32, #tpu.memory_space<vmem>>, vector<8x4xf32>
    %c0_1 = arith.constant 0 : index
    %c0_2 = arith.constant 0 : index
    %1 = vector.load %arg2[%c0_1, %c0_2] : memref<4x128xf32, #tpu.memory_space<vmem>>, vector<4x128xf32>
    %cst = arith.constant dense<0.000000e+00> : vector<8x128xf32>
    %2 = tpu.matmul %0, %1, %cst {dimension_numbers = #tpu.dot_dimension_numbers<[1], [0], [0], [1], [0, 0, 1, 1], [], []>} : vector<8x4xf32>, vector<4x128xf32>, vector<8x128xf32> -> vector<8x128xf32>
    %c0_3 = arith.constant 0 : index
    %c0_4 = arith.constant 0 : index
    %3 = vector.load %arg3[%c0_3, %c0_4] : memref<1x128xf32, #tpu.memory_space<vmem>>, vector<1x128xf32>
    %4 = vector.broadcast %3 : vector<1x128xf32> to vector<8x128xf32>
    %5 = arith.addf %2, %4 : vector<8x128xf32>
    %cst_5 = arith.constant 0.000000e+00 : f32
    %6 = vector.broadcast %cst_5 : f32 to vector<8x128xf32>
    %7 = arith.maximumf %5, %6 : vector<8x128xf32>
    %c0_6 = arith.constant 0 : index
    %c0_7 = arith.constant 0 : index
    %8 = vector.load %arg4[%c0_6, %c0_7] : memref<128x2xf32, #tpu.memory_space<vmem>>, vector<128x2xf32>
    %cst_8 = arith.constant dense<0.000000e+00> : vector<8x2xf32>
    %9 = tpu.matmul %7, %8, %cst_8 {dimension_numbers = #tpu.dot_dimension_numbers<[1], [0], [0], [1], [0, 0, 1, 1], [], []>} : vector<8x128xf32>, vector<128x2xf32>, vector<8x2xf32> -> vector<8x2xf32>
    %c0_9 = arith.constant 0 : index
    %c0_10 = arith.constant 0 : index
    %10 = vector.load %arg5[%c0_9, %c0_10] : memref<1x2xf32, #tpu.memory_space<vmem>>, vector<1x2xf32>
    %11 = vector.broadcast %10 : vector<1x2xf32> to vector<8x2xf32>
    %12 = arith.addf %9, %11 : vector<8x2xf32>
    %c0_11 = arith.constant 0 : index
    %c0_12 = arith.constant 0 : index
    %13 = vector.load %arg6[%c0_11, %c0_12] : memref<8x2xf32, #tpu.memory_space<vmem>>, vector<8x2xf32>
    tpu.vector_store %arg6[%c0_11, %c0_12], %12 {strides = array<i32>} : memref<8x2xf32, #tpu.memory_space<vmem>>, vector<8x2xf32>,
    return
  }
  func.func @transform_0(%arg0: i32) -> (i32, i32) {
    %c0_i32 = arith.constant 0 : i32
    %c0_i32_0 = arith.constant 0 : i32
    return %arg0, %c0_i32 : i32, i32
  }
  func.func @transform_1(%arg0: i32) -> (i32, i32) {
    %c0_i32 = arith.constant 0 : i32
    %c0_i32_0 = arith.constant 0 : i32
    %c0_i32_1 = arith.constant 0 : i32
    return %c0_i32, %c0_i32_0 : i32, i32
  }
  func.func @transform_2(%arg0: i32) -> (i32, i32) {
    %c0_i32 = arith.constant 0 : i32
    %c0_i32_0 = arith.constant 0 : i32
    %c0_i32_1 = arith.constant 0 : i32
    return %c0_i32, %c0_i32_0 : i32, i32
  }
  func.func @transform_3(%arg0: i32) -> (i32, i32) {
    %c0_i32 = arith.constant 0 : i32
    %c0_i32_0 = arith.constant 0 : i32
    %c0_i32_1 = arith.constant 0 : i32
    return %c0_i32, %c0_i32_0 : i32, i32
  }
  func.func @transform_4(%arg0: i32) -> (i32, i32) {
    %c0_i32 = arith.constant 0 : i32
    %c0_i32_0 = arith.constant 0 : i32
    %c0_i32_1 = arith.constant 0 : i32
    return %c0_i32, %c0_i32_0 : i32, i32
  }
  func.func @transform_5(%arg0: i32) -> (i32, i32) {
    %c0_i32 = arith.constant 0 : i32
    %c0_i32_0 = arith.constant 0 : i32
    return %arg0, %c0_i32 : i32, i32
  }
}

</mosaic_0001>

<bundles_post_ra>
// kernel: qnet_forward.1
= control target key start
LH: loop header
LB: loop body
LE: loop exit
PB: predicated region body
PF: predicated region fallthrough
CT: control target
= control target key end

     0   :  { %vm33_vm0 = vcmask 1043456   ;;  %vm29_vm1 = vcmask 31744   ;;  %v272_v0 = vmov 0.0   ;;  %vm273_vm2 = vmmov 0   ;;  %s367_s1 = inlined_call_operand.vmem [shape: f32[4,128], index: 1, kind: input, shape index: {}]   ;;  %s368_s0 = inlined_call_operand.vmem [shape: f32[8,4], index: 0, kind: input, shape index: {}]   ;;  %s369_s3 = inlined_call_operand.vmem [shape: f32[128,2], index: 3, kind: input, shape index: {}]   ;;  %s370_s2 = inlined_call_operand.vmem [shape: f32[1,128], index: 2, kind: input, shape index: {}]   ;;  %s371_s4 = inlined_call_operand.vmem [shape: f32[1,2], index: 4, kind: input, shape index: {}]   ;;  %s372_s5 = inlined_call_operand.vmem [shape: f32[8,2], index: 5, kind: output, shape index: {}]  }
   0x1   :  { %230 = vmatprep.subr.mxu0 %v272_v0  ;;  %v21_v1 = vld [vmem:[%s367_s1] sm:$0xf]  ;;  %232 = vmatprep.mubr.msk.f32.mxu0 %vm273_vm2, %v272_v0  ;;  %v123_v3 = vld [vmem:[%s369_s3 + $0x78] sm:$0xff]  ;;  %v122_v4 = vld [vmem:[%s369_s3 + $0x70] sm:$0xff]  ;;  %vm201_vm3 = vcmask 15360  }
   0x2   :  { %v20_v2 = vld [vmem:[%s368_s0] sm:$0xff]  ;;  %231 = vmatpush3.msk.msra.mxu0 %vm33_vm0, %v21_v1  ;;  %235 = vmatprep.subr.mxu1 %v272_v0  ;;  %v121_v5 = vld [vmem:[%s369_s3 + $0x68] sm:$0xff]  ;;  %v119_v7 = vld [vmem:[%s369_s3 + $0x58] sm:$0xff] }
   0x3   :  { %233 = vmatmul.mubr.msk.f32.vlgmr.msra.gmra.mxu0 %vm29_vm1, %v20_v2  ;;  %236 = vmatpush3.msra.mxu1 %v123_v3  ;;  %v120_v6 = vld [vmem:[%s369_s3 + $0x60] sm:$0xff]  ;;  %v118_v8 = vld [vmem:[%s369_s3 + $0x50] sm:$0xff]  ;;  %v117_v9 = vld [vmem:[%s369_s3 + $0x48] sm:$0xff] }
   0x4   :  { %237 = vmatprep.subr.mxu1 %v272_v0  ;;  %267 = vmatprep.mubr.msk.f32.mxu1 %vm273_vm2, %v272_v0  ;;  %v116_v10 = vld [vmem:[%s369_s3 + $0x40] sm:$0xff]  ;;  %v115_v11 = vld [vmem:[%s369_s3 + $0x38] sm:$0xff]  ;;  %v114_v12 = vld [vmem:[%s369_s3 + $0x30] sm:$0xff] }
   0x5   :  { %238 = vmatpush3.msra.mxu1 %v122_v4  ;;  %v113_v13 = vld [vmem:[%s369_s3 + $0x28] sm:$0xff]  ;;  %v112_v14 = vld [vmem:[%s369_s3 + $0x20] sm:$0xff]  ;;  %v111_v15 = vld [vmem:[%s369_s3 + $0x18] sm:$0xff] }
   0x6   :  { %239 = vmatprep.subr.mxu1 %v272_v0  ;;  %v110_v16 = vld [vmem:[%s369_s3 + $0x10] sm:$0xff]  ;;  %v109_v17 = vld [vmem:[%s369_s3 + $0x8] sm:$0xff]  ;;  %v108_v18 = vld [vmem:[%s369_s3] sm:$0xff] }
   0x7   :  { %240 = vmatpush3.msra.mxu1 %v121_v5  ;;  %v207_v19 = vld [vmem:[%s370_s2] ss:$0 sm:$0xff] }
   0x8   :  { %241 = vmatprep.subr.mxu1 %v272_v0  ;;  %v210_v24 = vld [vmem:[%s371_s4] ss:$0 sm:$0xff] }
   0x9   :  { %242 = vmatpush3.msra.mxu1 %v120_v6 }
   0xa   :  { %243 = vmatprep.subr.mxu1 %v272_v0 }
   0xb   :  { %244 = vmatpush3.msra.mxu1 %v119_v7 }
   0xc   :  { %245 = vmatprep.subr.mxu1 %v272_v0 }
   0xd   :  { %246 = vmatpush3.msra.mxu1 %v118_v8 }
   0xe   :  { %247 = vmatprep.subr.mxu1 %v272_v0 }
   0xf   :  { %248 = vmatpush3.msra.mxu1 %v117_v9 }
  0x10   :  { %249 = vmatprep.subr.mxu1 %v272_v0 }
  0x11   :  { %250 = vmatpush3.msra.mxu1 %v116_v10 }
  0x12   :  { %251 = vmatprep.subr.mxu1 %v272_v0 }
  0x13   :  { %252 = vmatpush3.msra.mxu1 %v115_v11 }
  0x14   :  { %253 = vmatprep.subr.mxu1 %v272_v0 }
  0x15   :  { %254 = vmatpush3.msra.mxu1 %v114_v12 }
  0x16   :  { %255 = vmatprep.subr.mxu1 %v272_v0 }
  0x17   :  { %256 = vmatpush3.msra.mxu1 %v113_v13 }
  0x18   :  { %257 = vmatprep.subr.mxu1 %v272_v0 }
  0x19   :  { %258 = vmatpush3.msra.mxu1 %v112_v14 }
  0x1a   :  { %259 = vmatprep.subr.mxu1 %v272_v0 }
  0x1b   :  { %260 = vmatpush3.msra.mxu1 %v111_v15 }
  0x1c   :  { %261 = vmatprep.subr.mxu1 %v272_v0 }
  0x1d   :  { %262 = vmatpush3.msra.mxu1 %v110_v16 }
  0x1e   :  { %263 = vmatprep.subr.mxu1 %v272_v0 }
  0x1f   :  { %264 = vmatpush3.msra.mxu1 %v109_v17 }
  0x20   :  { %265 = vmatprep.subr.mxu1 %v272_v0 }
  0x21   :  { %266 = vmatpush3.msra.mxu1 %v108_v18 }
  0xc3   :  { %v103_v20 = vpop.f32.mrf.mxu0 }
  0xc4   :  { %v104_v21 = vadd.f32 %v207_v19, %v103_v20 }
  0xc5   :  { %v234_v22 = vpop.f32.mrf.mxu0 }
  0xc6   :  { %v107_v23 = vmax.f32 %v104_v21, 0.0 }
  0xc8   :  { %268 = vmatmul.mubr.f32.vlgmr.msra.gmra.mxu1 %v107_v23 }
 0x188   :  { %v197_v25 = vpop.f32.mrf.mxu1 }
 0x189   :  { %v198_v26 = vadd.f32 %v210_v24, %v197_v25 }
 0x18a   :  { %v269_v27 = vpop.f32.mrf.mxu1 }
 0x18b   :  { %202 = vst.msk [vmem:[%s372_s5] sm:$0xff] %vm201_vm3, %v198_v26 }

</bundles_post_ra>
